<compile_context>
chip_gen: v6e
topology: v6e:2x2x1
jax: 0.10.0
libtpu: 0.0.40
codegen_flags: <defaults>
</compile_context>

<pallas_src>
import jax
import jax.numpy as jnp
from jax.experimental import pallas as pl
from jax.experimental.pallas import tpu as pltpu


def _make_pos_embedding(emb_size: int, max_len: int = 5000) -> jnp.ndarray:
    """Deterministic sinusoidal positional-encoding table, shape (max_len, emb_size)."""
    den = jnp.exp(-jnp.arange(0, emb_size, 2, dtype=jnp.float32)
                  * (jnp.log(10000.0) / emb_size))                 # (emb_size//2,)
    pos = jnp.arange(0, max_len, dtype=jnp.float32)[:, None]        # (max_len, 1)
    angles = pos * den[None, :]                                     # (max_len, emb_size//2)
    pe = jnp.zeros((max_len, emb_size), dtype=jnp.float32)
    pe = pe.at[:, 0::2].set(jnp.sin(angles))
    pe = pe.at[:, 1::2].set(jnp.cos(angles))
    return pe


def _add_kernel(x_ref, pe_ref, o_ref):
    # x/out block: (B_blk, tt, C); pe block: (tt, C) — broadcast add over the batch dim.
    o_ref[...] = (x_ref[...] + pe_ref[...]).astype(o_ref.dtype)


def _vmem_limit_bytes() -> int:
    """~half of physical VMEM: 64 MiB on v5e/v6e (128 MiB), 32 MiB on v7x (64 MiB)."""
    try:
        cap = int(pltpu.get_tpu_info().vmem_capacity_bytes)
    except Exception:
        cap = 64 << 20  # conservative fallback (v7x-sized physical VMEM)
    return int(min(64 << 20, max(16 << 20, cap // 2)))


def pos_encoder(x: jnp.ndarray, pos_embedding: jnp.ndarray) -> jnp.ndarray:
    """x: (B, T, E); pos_embedding: (max_len, E). Returns x + pos_embedding[:T]."""
    B, T, E = x.shape
    itemsize = jnp.dtype(x.dtype).itemsize
    # Sublane multiple for the dtype: f32 -> 8, bf16 -> 16, int8/fp8 -> 32.
    sublane = {1: 32, 2: 16}.get(itemsize, 8)

    vmem_limit = _vmem_limit_bytes()
    # ~6 double-buffered blocks (x, pe, out) plus 2x headroom -> ~2-5 MiB per buffer.
    per_block_budget = max(1 << 20, vmem_limit // 12)

    # Slice the table to the rows actually needed BEFORE casting, so a bf16 model does
    # not pay a per-call f32->bf16 convert over the whole (max_len, E) table.
    pe_t = pos_embedding[:T]
    if pe_t.dtype != x.dtype:
        pe_t = pe_t.astype(x.dtype)

    # Lane-dense (multiple-of-128 last dim) view of the problem.
    if E % 128 == 0:
        R, C = T, E
        x3, pe2 = x, pe_t
        unpack = lambda o: o
    elif (T * E) % 128 == 0:
        # Repack each batch row to (T*E/128, 128): full-lane stores instead of vst.msk.
        C = 128
        R = (T * E) // C
        x3 = x.reshape(B, R, C)
        pe2 = pe_t.reshape(R, C)
        unpack = lambda o: o.reshape(B, T, E)
    else:
        # Pad E up to the next lane multiple: full-lane vst, output sliced afterwards.
        C = ((E + 127) // 128) * 128
        pad = C - E
        R = T
        x3 = jnp.pad(x, ((0, 0), (0, 0), (0, pad)))
        pe2 = jnp.pad(pe_t, ((0, 0), (0, pad)))
        unpack = lambda o: o[:, :, :E]

    row_bytes = C * itemsize

    # Prefer folding the whole batch into one block for small B: pe is fetched once per
    # seq tile and the number of grid steps drops by B (each step ~0.35us of overhead).
    raw_tt_folded = per_block_budget // max(1, B * row_bytes)
    use_folded = (B <= 8) and (raw_tt_folded >= min(sublane, R))

    # NOTE on partial last tiles (R % tt != 0): out-of-bounds output rows are discarded
    # by Pallas and the matching out-of-bounds pe reads are padding whose results are
    # never kept — do not "fix" this by shrinking the last block.
    if use_folded:
        tt = max(sublane, (raw_tt_folded // sublane) * sublane)
        if tt >= R:
            tt = R  # full-extent block is always legal regardless of sublane multiple
        grid = (pl.cdiv(R, tt),)
        in_specs = [
            pl.BlockSpec((B, tt, C), lambda t: (0, t, 0)),   # whole batch per seq tile
            pl.BlockSpec((tt, C), lambda t: (t, 0)),         # pe windowed once per tile
        ]
        out_specs = pl.BlockSpec((B, tt, C), lambda t: (0, t, 0))
        dims = ("parallel",)
    else:
        tt = max(sublane, (per_block_budget // max(1, row_bytes)) // sublane * sublane)
        if tt >= R:
            tt = R
        # Batch innermost: pe's block index depends only on the outer seq-tile axis, so
        # its DMA is elided on consecutive batch steps (Pallas only elides when the block
        # index is unchanged between CONSECUTIVE grid steps).
        grid = (pl.cdiv(R, tt), B)
        in_specs = [
            pl.BlockSpec((1, tt, C), lambda t, b: (b, t, 0)),
            pl.BlockSpec((tt, C), lambda t, b: (t, 0)),
        ]
        out_specs = pl.BlockSpec((1, tt, C), lambda t, b: (b, t, 0))
        dims = ("parallel", "arbitrary")

    out = pl.pallas_call(
        _add_kernel,
        out_shape=jax.ShapeDtypeStruct((B, R, C), x.dtype),
        grid_spec=pltpu.PrefetchScalarGridSpec(
            num_scalar_prefetch=0,
            grid=grid,
            in_specs=in_specs,
            out_specs=out_specs,
        ),
        compiler_params=pltpu.CompilerParams(
            dimension_semantics=dims,
            vmem_limit_bytes=vmem_limit,
        ),
        # No input_output_aliases: without caller-side donation XLA would insert a
        # defensive copy of x (an extra full HBM pass) — net loss for this op.
    )(x3, pe2)

    return unpack(out)


if __name__ == "__main__":
    B, T, E = 2, 8, 32
    MAX_LEN = 5000

    key = jax.random.PRNGKey(0)
    x = jax.random.normal(key, (B, T, E), dtype=jnp.float32)

    pe_table = _make_pos_embedding(E, MAX_LEN)

    # Reference (same math as the PyTorch forward).
    ref = x + pe_table[None, :T, :]

    out = pos_encoder(x, pe_table)
    out = jax.block_until_ready(out)

    assert out.shape == (B, T, E)
    assert jnp.allclose(out, ref, atol=1e-6), "mismatch vs reference"

    print("KERNEL_OK")
</pallas_src>

<mosaic_0001>
module attributes {stable_mosaic.version = 11 : i64} {
  func.func @_add_kernel(%arg0: i32, %arg1: memref<2x2x128xf32, #tpu.memory_space<vmem>>, %arg2: memref<2x128xf32, #tpu.memory_space<vmem>>, %arg3: memref<2x2x128xf32, #tpu.memory_space<vmem>>) attributes {dimension_semantics = [#tpu.dimension_semantics<parallel>], iteration_bounds = array<i64: 1>, scalar_prefetch = 0 : i64, scratch_operands = 0 : i64, tpu.core_type = #tpu.core_type<tc>, window_params = [{transform_indices = @transform_0, window_bounds = array<i64: 2, 2, 128>}, {transform_indices = @transform_1, window_bounds = array<i64: 2, 128>}, {transform_indices = @transform_2, window_bounds = array<i64: 2, 2, 128>}]} {
    %c0 = arith.constant 0 : index
    %c0_0 = arith.constant 0 : index
    %c0_1 = arith.constant 0 : index
    %0 = vector.load %arg1[%c0, %c0_0, %c0_1] : memref<2x2x128xf32, #tpu.memory_space<vmem>>, vector<2x2x128xf32>
    %c0_2 = arith.constant 0 : index
    %c0_3 = arith.constant 0 : index
    %1 = vector.load %arg2[%c0_2, %c0_3] : memref<2x128xf32, #tpu.memory_space<vmem>>, vector<2x128xf32>
    %2 = vector.shape_cast %1 : vector<2x128xf32> to vector<1x2x128xf32>
    %3 = vector.broadcast %2 : vector<1x2x128xf32> to vector<2x2x128xf32>
    %4 = arith.addf %0, %3 : vector<2x2x128xf32>
    %c0_4 = arith.constant 0 : index
    %c0_5 = arith.constant 0 : index
    %c0_6 = arith.constant 0 : index
    %5 = vector.load %arg3[%c0_4, %c0_5, %c0_6] : memref<2x2x128xf32, #tpu.memory_space<vmem>>, vector<2x2x128xf32>
    tpu.vector_store %arg3[%c0_4, %c0_5, %c0_6], %4 {strides = array<i32>} : memref<2x2x128xf32, #tpu.memory_space<vmem>>, vector<2x2x128xf32>,
    return
  }
  func.func @transform_0(%arg0: i32) -> (i32, i32, i32) {
    %c0_i32 = arith.constant 0 : i32
    %c0_i32_0 = arith.constant 0 : i32
    %c0_i32_1 = arith.constant 0 : i32
    return %c0_i32, %arg0, %c0_i32_0 : i32, i32, i32
  }
  func.func @transform_1(%arg0: i32) -> (i32, i32) {
    %c0_i32 = arith.constant 0 : i32
    %c0_i32_0 = arith.constant 0 : i32
    return %arg0, %c0_i32 : i32, i32
  }
  func.func @transform_2(%arg0: i32) -> (i32, i32, i32) {
    %c0_i32 = arith.constant 0 : i32
    %c0_i32_0 = arith.constant 0 : i32
    %c0_i32_1 = arith.constant 0 : i32
    return %c0_i32, %arg0, %c0_i32_0 : i32, i32, i32
  }
}

</mosaic_0001>

<bundles_post_ra>
// kernel: tpu_custom_call.1
= control target key start
LH: loop header
LB: loop body
LE: loop exit
PB: predicated region body
PF: predicated region fallthrough
CT: control target
= control target key end

     0   :  { %7 = vsyncpa [#allocation3], 0  ;;  %s169_s0 = inlined_call_operand.hbm [shape: f32[2,2,128], index: 0, kind: input, shape index: {}]   ;;  %s170_s1 = inlined_call_operand.hbm [shape: f32[2,128], index: 1, kind: input, shape index: {}]   ;;  %s171_s2 = inlined_call_operand.hbm [shape: f32[2,2,128], index: 2, kind: output, shape index: {}]  }
   0x1   :  { %8 = vsyncpa [#allocation6], 0 }
   0x2   :  { %9 = vsyncpa [#allocation4], 0  ;;  %s134_s9 = smov [#allocation2]  }
   0x3   :  { %s15_s10 = sshll.u32 %s134_s9, 4  ;;  %s16_s10 = int_to_ptr.vmem [resolvable:$true] %s15_s10 }
   0x4   :  { %s76_s11 = scalar_lea.vmem %s16_s10, 64  ;;  %p81_p1 = scmp.lt.s32.totalorder %s16_s10, %s16_s10 }
   0x5   :  { %p77_p0 = scmp.ne.s32.totalorder %s16_s10, %s76_s11  ;;  %p82_p2 = scmp.lt.s32.totalorder %s76_s11, %s76_s11 }
   0x7   :  { %p83_p3 = por %p82_p2, %p81_p1 }
   0x9   :  { %p84_p4 = pnand %p83_p3, %p77_p0 }
   0xb   :  { %87 = shalt.err (!%p84_p4)
}
   0xc   :  { %s135_s12 = smov 32   ;;  %s136_s13 = smov 2  }
   0xd   :  { %21 = dma.hbm_to_vmem [thread:$0]  %s169_s0, 64, %s16_s10, [#allocation3], %s135_s12, %s135_s12, %s136_s13  }
   0xe   :  { %s137_s16 = smov [#allocation5]  }
   0xf   :  { %s28_s17 = sshll.u32 %s137_s16, 4  ;;  %s29_s17 = int_to_ptr.vmem [resolvable:$true] %s28_s17 }
  0x10   :  { %s96_s18 = scalar_lea.vmem %s29_s17, 32  ;;  %p101_p6 = scmp.lt.s32.totalorder %s29_s17, %s29_s17 }
  0x11   :  { %p97_p5 = scmp.ne.s32.totalorder %s29_s17, %s96_s18  ;;  %p102_p7 = scmp.lt.s32.totalorder %s96_s18, %s96_s18 }
  0x13   :  { %p103_p8 = por %p102_p7, %p101_p6 }
  0x15   :  { %p104_p9 = pnand %p103_p8, %p97_p5 }
  0x17   :  { %107 = shalt.err (!%p104_p9)
}
  0x18   :  { %31 = dma.hbm_to_vmem [thread:$0]  %s170_s1, 32, %s29_s17, [#allocation6]  }
  0x19   :  { %128 = dma.done.wait [#allocation3], 64  }
  0x1a   :  { %129 = vsyncadd [#allocation3], 4294967232 }
  0x1b   :  { %130 = dma.done.wait [#allocation6], 32  }
  0x1c   :  { %131 = vsyncadd [#allocation6], 4294967264  ;;  %s138_s21 = smov [#allocation7]   ;;  %v38_v0 = vld [vmem:[#allocation2] sm:$0x3] }
  0x1d   :  { %s50_s0 = sshll.u32 %s138_s21, 4  ;;  %v40_v1 = vld [vmem:[#allocation5] sm:$0x3]  ;;  %v39_v2 = vld [vmem:[#allocation2 + $0x2] sm:$0x3]  ;;  %s51_s0 = int_to_ptr.vmem [resolvable:$true] %s50_s0 }
  0x1e   :  { %v41_v3 = vadd.f32 %v40_v1, %v38_v0  ;;  %v42_v4 = vadd.f32 %v40_v1, %v39_v2  ;;  %s108_s22 = scalar_lea.vmem %s51_s0, 64  ;;  %p113_p11 = scmp.lt.s32.totalorder %s51_s0, %s51_s0 }
  0x1f   :  { %p109_p10 = scmp.ne.s32.totalorder %s51_s0, %s108_s22  ;;  %p114_p12 = scmp.lt.s32.totalorder %s108_s22, %s108_s22 }
  0x20   :  { %43 = vst [vmem:[#allocation7] sm:$0x3] %v41_v3  ;;  %44 = vst [vmem:[#allocation7 + $0x2] sm:$0x3] %v42_v4 }
  0x21   :  { %p115_p13 = por %p114_p12, %p113_p11 }
  0x23   :  { %p116_p0 = pnand %p115_p13, %p109_p10 }
  0x25   :  { %119 = shalt.err (!%p116_p0)
}
  0x26   :  { %56 = dma.vmem_to_hbm [thread:$0]  %s51_s0, 64, %s171_s2, [#allocation4], %s135_s12, %s135_s12, %s136_s13  }
  0x27   :  { %132 = dma.done.wait [#allocation4], 64  }
  0x28   :  { %133 = vsyncadd [#allocation4], 4294967232 }
  0x29   :  { %60 = vsyncpa [#allocation3], 1 }
  0x2a   :  { %61 = vsyncpa [#allocation6], 1 }
  0x2b   :  { %62 = vsyncpa [#allocation4], 1 }

</bundles_post_ra>
